<compile_context>
chip_gen: v7x
topology: tpu7x:2x2x1
jax: 0.10.0
libtpu: 0.0.40
codegen_flags: <defaults>
</compile_context>

<pallas_src>
import math

import jax
import jax.numpy as jnp
from jax.experimental import pallas as pl
from jax.experimental.pallas import tpu as pltpu


def _round_up(x, m):
    return ((x + m - 1) // m) * m


def _leaky_relu(x, slope=0.1):
    return jnp.where(x > 0, x, slope * x)


def discriminator_kernel(x_ref, w1_ref, b1_ref, w2_ref, b2_ref, w3_ref, b3_ref,
                         o_ref):
    # x_ref: (TB, K_pad) bf16; w1: (K_pad, 512) bf16; w2: (512, 256) bf16
    # b1: (1, 512) f32; b2: (1, 256) f32; w3: (1, 256) f32; b3: (1, 1) f32
    x = x_ref[...]

    # Layer 1: Linear(in_features, 512) + LeakyReLU(0.1)   (bf16 MXU, f32 acc)
    h1 = jnp.dot(x, w1_ref[...], preferred_element_type=jnp.float32)
    h1 = _leaky_relu(h1 + b1_ref[...])

    # Layer 2: Linear(512, 256) + LeakyReLU(0.1)
    h2 = jnp.dot(h1.astype(jnp.bfloat16), w2_ref[...],
                 preferred_element_type=jnp.float32)
    h2 = _leaky_relu(h2 + b2_ref[...])

    # Layer 3: Linear(256, 1) + Sigmoid.
    # N=1 matmul wastes the MXU -> do it as a VPU broadcast-mul + lane reduce.
    h3 = jnp.sum(h2 * w3_ref[...], axis=-1, keepdims=True) + b3_ref[...]
    o_ref[...] = jax.nn.sigmoid(h3).astype(o_ref.dtype)


def prepare_params(params, in_features_padded):
    """One-time (outside the hot path) cast/pad of params into kernel layout."""
    w1 = params["w1"].astype(jnp.bfloat16)
    pad_k = in_features_padded - w1.shape[0]
    if pad_k > 0:
        w1 = jnp.pad(w1, ((0, pad_k), (0, 0)))          # zero rows contribute 0
    return dict(
        w1=w1,                                           # (K_pad, 512) bf16
        b1=params["b1"].astype(jnp.float32),             # (1, 512)     f32
        w2=params["w2"].astype(jnp.bfloat16),            # (512, 256)   bf16
        b2=params["b2"].astype(jnp.float32),             # (1, 256)     f32
        w3=params["w3"].reshape(1, -1).astype(jnp.float32),  # (1, 256)  f32
        b3=params["b3"].astype(jnp.float32),             # (1, 1)       f32
    )


def discriminator_forward(x, prep, *, tb=256):
    """x: (B, in_features) float32. prep: output of prepare_params."""
    B, K = x.shape
    K_pad = prep["w1"].shape[0]

    # Batch tile: multiple of 8 (sublane), up to `tb` (multiple of 256 for v6e MXU).
    TB = tb if B >= tb else _round_up(B, 8)
    B_pad = _round_up(B, TB)
    n_tiles = pl.cdiv(B_pad, TB)

    xb = x.astype(jnp.bfloat16)
    xb = jnp.pad(xb, ((0, B_pad - B), (0, K_pad - K)))   # zero-pad batch & K

    const = lambda a: pl.BlockSpec(a.shape, lambda i: (0,) * a.ndim)

    out = pl.pallas_call(
        discriminator_kernel,
        out_shape=jax.ShapeDtypeStruct((B_pad, 1), jnp.float32),
        grid=(n_tiles,),
        in_specs=[
            pl.BlockSpec((TB, K_pad), lambda i: (i, 0)),   # x: tiled over batch
            const(prep["w1"]), const(prep["b1"]),          # weights/biases resident
            const(prep["w2"]), const(prep["b2"]),
            const(prep["w3"]), const(prep["b3"]),
        ],
        out_specs=pl.BlockSpec((TB, 1), lambda i: (i, 0)),
        compiler_params=pltpu.CompilerParams(
            dimension_semantics=("parallel",),
            vmem_limit_bytes=16 << 20,
        ),
    )(xb, prep["w1"], prep["b1"], prep["w2"], prep["b2"],
      prep["w3"], prep["b3"])

    return out[:B]


def init_params(key, in_features):
    """Deterministic init mimicking PyTorch nn.Linear default (uniform +-1/sqrt(fan_in))."""
    def linear(k, fan_in, fan_out):
        kw, kb = jax.random.split(k)
        bound = 1.0 / math.sqrt(fan_in)
        w = jax.random.uniform(kw, (fan_in, fan_out), jnp.float32, -bound, bound)
        b = jax.random.uniform(kb, (1, fan_out), jnp.float32, -bound, bound)
        return w, b

    k1, k2, k3 = jax.random.split(key, 3)
    w1, b1 = linear(k1, in_features, 512)
    w2, b2 = linear(k2, 512, 256)
    w3, b3 = linear(k3, 256, 1)
    return dict(w1=w1, b1=b1, w2=w2, b2=b2, w3=w3, b3=b3)


def reference_forward(x, p, *, bf16_matmul=True):
    """Pure-JAX reference. bf16_matmul=True mirrors the kernel's numerics."""
    cast = (lambda a: a.astype(jnp.bfloat16)) if bf16_matmul else (lambda a: a)
    h1 = _leaky_relu(jnp.dot(cast(x), cast(p["w1"]),
                             preferred_element_type=jnp.float32) + p["b1"])
    h2 = _leaky_relu(jnp.dot(cast(h1), cast(p["w2"]),
                             preferred_element_type=jnp.float32) + p["b2"])
    h3 = jnp.dot(h2, p["w3"], preferred_element_type=jnp.float32) + p["b3"]
    return jax.nn.sigmoid(h3)


if __name__ == "__main__":
    key = jax.random.PRNGKey(0)
    k_params, k_x = jax.random.split(key)

    B, in_features = 8, 784  # e.g. flattened 28x28 MNIST images
    params = init_params(k_params, in_features)
    x = jax.random.normal(k_x, (B, in_features), jnp.float32)

    K_pad = _round_up(in_features, 128)          # 784 -> 896
    prep = prepare_params(params, K_pad)

    out = discriminator_forward(x, prep)
    out = jax.block_until_ready(out)

    # Check against a reference that mirrors the kernel's bf16-matmul numerics...
    ref_bf16 = reference_forward(x, params, bf16_matmul=True)
    assert out.shape == (B, 1)
    assert jnp.allclose(out, ref_bf16, atol=2e-3, rtol=2e-3)
    # ...and loosely against the pure-f32 forward (bf16 weight quantization error).
    ref_f32 = reference_forward(x, params, bf16_matmul=False)
    assert jnp.allclose(out, ref_f32, atol=5e-2, rtol=5e-2)

    print("KERNEL_OK")
</pallas_src>

<mosaic_0001>
module attributes {stable_mosaic.version = 11 : i64} {
  func.func @discriminator_kernel(%arg0: i32, %arg1: memref<8x896xbf16, #tpu.memory_space<vmem>>, %arg2: memref<896x512xbf16, #tpu.memory_space<vmem>>, %arg3: memref<1x512xf32, #tpu.memory_space<vmem>>, %arg4: memref<512x256xbf16, #tpu.memory_space<vmem>>, %arg5: memref<1x256xf32, #tpu.memory_space<vmem>>, %arg6: memref<1x256xf32, #tpu.memory_space<vmem>>, %arg7: memref<1x1xf32, #tpu.memory_space<vmem>>, %arg8: memref<8x1xf32, #tpu.memory_space<vmem>>) attributes {dimension_semantics = [#tpu.dimension_semantics<parallel>], iteration_bounds = array<i64: 1>, scalar_prefetch = 0 : i64, scratch_operands = 0 : i64, tpu.core_type = #tpu.core_type<tc>, window_params = [{transform_indices = @transform_0, window_bounds = array<i64: 8, 896>}, {pipeline_mode = #tpu.pipeline_mode<synchronous>, transform_indices = @transform_1, window_bounds = array<i64: 896, 512>}, {pipeline_mode = #tpu.pipeline_mode<synchronous>, transform_indices = @transform_2, window_bounds = array<i64: 1, 512>}, {pipeline_mode = #tpu.pipeline_mode<synchronous>, transform_indices = @transform_3, window_bounds = array<i64: 512, 256>}, {pipeline_mode = #tpu.pipeline_mode<synchronous>, transform_indices = @transform_4, window_bounds = array<i64: 1, 256>}, {pipeline_mode = #tpu.pipeline_mode<synchronous>, transform_indices = @transform_5, window_bounds = array<i64: 1, 256>}, {pipeline_mode = #tpu.pipeline_mode<synchronous>, transform_indices = @transform_6, window_bounds = array<i64: 1, 1>}, {transform_indices = @transform_7, window_bounds = array<i64: 8, 1>}]} {
    %c0 = arith.constant 0 : index
    %c0_0 = arith.constant 0 : index
    %0 = vector.load %arg1[%c0, %c0_0] : memref<8x896xbf16, #tpu.memory_space<vmem>>, vector<8x896xbf16>
    %c0_1 = arith.constant 0 : index
    %c0_2 = arith.constant 0 : index
    %1 = vector.load %arg2[%c0_1, %c0_2] : memref<896x512xbf16, #tpu.memory_space<vmem>>, vector<896x512xbf16>
    %cst = arith.constant dense<0.000000e+00> : vector<8x512xf32>
    %2 = tpu.matmul %0, %1, %cst {dimension_numbers = #tpu.dot_dimension_numbers<[1], [0], [0], [1], [0, 0, 1, 1], [], []>} : vector<8x896xbf16>, vector<896x512xbf16>, vector<8x512xf32> -> vector<8x512xf32>
    %c0_3 = arith.constant 0 : index
    %c0_4 = arith.constant 0 : index
    %3 = vector.load %arg3[%c0_3, %c0_4] : memref<1x512xf32, #tpu.memory_space<vmem>>, vector<1x512xf32>
    %4 = vector.broadcast %3 : vector<1x512xf32> to vector<8x512xf32>
    %5 = arith.addf %2, %4 : vector<8x512xf32>
    %cst_5 = arith.constant 0.000000e+00 : f32
    %6 = vector.broadcast %cst_5 : f32 to vector<8x512xf32>
    %7 = arith.cmpf ogt, %5, %6 : vector<8x512xf32>
    %cst_6 = arith.constant 1.000000e-01 : f32
    %8 = vector.broadcast %cst_6 : f32 to vector<8x512xf32>
    %9 = arith.mulf %8, %5 : vector<8x512xf32>
    %10 = arith.select %7, %5, %9 : vector<8x512xi1>, vector<8x512xf32>
    %11 = arith.truncf %10 : vector<8x512xf32> to vector<8x512xbf16>
    %c0_7 = arith.constant 0 : index
    %c0_8 = arith.constant 0 : index
    %12 = vector.load %arg4[%c0_7, %c0_8] : memref<512x256xbf16, #tpu.memory_space<vmem>>, vector<512x256xbf16>
    %cst_9 = arith.constant dense<0.000000e+00> : vector<8x256xf32>
    %13 = tpu.matmul %11, %12, %cst_9 {dimension_numbers = #tpu.dot_dimension_numbers<[1], [0], [0], [1], [0, 0, 1, 1], [], []>} : vector<8x512xbf16>, vector<512x256xbf16>, vector<8x256xf32> -> vector<8x256xf32>
    %c0_10 = arith.constant 0 : index
    %c0_11 = arith.constant 0 : index
    %14 = vector.load %arg5[%c0_10, %c0_11] : memref<1x256xf32, #tpu.memory_space<vmem>>, vector<1x256xf32>
    %15 = vector.broadcast %14 : vector<1x256xf32> to vector<8x256xf32>
    %16 = arith.addf %13, %15 : vector<8x256xf32>
    %cst_12 = arith.constant 0.000000e+00 : f32
    %17 = vector.broadcast %cst_12 : f32 to vector<8x256xf32>
    %18 = arith.cmpf ogt, %16, %17 : vector<8x256xf32>
    %cst_13 = arith.constant 1.000000e-01 : f32
    %19 = vector.broadcast %cst_13 : f32 to vector<8x256xf32>
    %20 = arith.mulf %19, %16 : vector<8x256xf32>
    %21 = arith.select %18, %16, %20 : vector<8x256xi1>, vector<8x256xf32>
    %c0_14 = arith.constant 0 : index
    %c0_15 = arith.constant 0 : index
    %22 = vector.load %arg6[%c0_14, %c0_15] : memref<1x256xf32, #tpu.memory_space<vmem>>, vector<1x256xf32>
    %23 = vector.broadcast %22 : vector<1x256xf32> to vector<8x256xf32>
    %24 = arith.mulf %21, %23 : vector<8x256xf32>
    %cst_16 = arith.constant dense<0.000000e+00> : vector<8xf32>
    %25 = vector.multi_reduction <add>, %24, %cst_16 [1] : vector<8x256xf32> to vector<8xf32>
    %26 = vector.shape_cast %25 : vector<8xf32> to vector<8x1xf32>
    %c0_17 = arith.constant 0 : index
    %c0_18 = arith.constant 0 : index
    %27 = vector.load %arg7[%c0_17, %c0_18] : memref<1x1xf32, #tpu.memory_space<vmem>>, vector<1x1xf32>
    %28 = vector.broadcast %27 : vector<1x1xf32> to vector<8x1xf32>
    %29 = arith.addf %26, %28 : vector<8x1xf32>
    %30 = arith.negf %29 : vector<8x1xf32>
    %31 = math.exp %30 : vector<8x1xf32>
    %cst_19 = arith.constant 1.000000e+00 : f32
    %32 = vector.broadcast %cst_19 : f32 to vector<8x1xf32>
    %33 = arith.addf %32, %31 : vector<8x1xf32>
    %34 = arith.divf %32, %33 : vector<8x1xf32>
    %c0_20 = arith.constant 0 : index
    %c0_21 = arith.constant 0 : index
    %35 = vector.load %arg8[%c0_20, %c0_21] : memref<8x1xf32, #tpu.memory_space<vmem>>, vector<8x1xf32>
    tpu.vector_store %arg8[%c0_20, %c0_21], %34 {strides = array<i32>} : memref<8x1xf32, #tpu.memory_space<vmem>>, vector<8x1xf32>,
    return
  }
  func.func @transform_0(%arg0: i32) -> (i32, i32) {
    %c0_i32 = arith.constant 0 : i32
    %c0_i32_0 = arith.constant 0 : i32
    return %arg0, %c0_i32 : i32, i32
  }
  func.func @transform_1(%arg0: i32) -> (i32, i32) {
    %c0_i32 = arith.constant 0 : i32
    %c0_i32_0 = arith.constant 0 : i32
    %c0_i32_1 = arith.constant 0 : i32
    return %c0_i32, %c0_i32_0 : i32, i32
  }
  func.func @transform_2(%arg0: i32) -> (i32, i32) {
    %c0_i32 = arith.constant 0 : i32
    %c0_i32_0 = arith.constant 0 : i32
    %c0_i32_1 = arith.constant 0 : i32
    return %c0_i32, %c0_i32_0 : i32, i32
  }
  func.func @transform_3(%arg0: i32) -> (i32, i32) {
    %c0_i32 = arith.constant 0 : i32
    %c0_i32_0 = arith.constant 0 : i32
    %c0_i32_1 = arith.constant 0 : i32
    return %c0_i32, %c0_i32_0 : i32, i32
  }
  func.func @transform_4(%arg0: i32) -> (i32, i32) {
    %c0_i32 = arith.constant 0 : i32
    %c0_i32_0 = arith.constant 0 : i32
    %c0_i32_1 = arith.constant 0 : i32
    return %c0_i32, %c0_i32_0 : i32, i32
  }
  func.func @transform_5(%arg0: i32) -> (i32, i32) {
    %c0_i32 = arith.constant 0 : i32
    %c0_i32_0 = arith.constant 0 : i32
    %c0_i32_1 = arith.constant 0 : i32
    return %c0_i32, %c0_i32_0 : i32, i32
  }
  func.func @transform_6(%arg0: i32) -> (i32, i32) {
    %c0_i32 = arith.constant 0 : i32
    %c0_i32_0 = arith.constant 0 : i32
    %c0_i32_1 = arith.constant 0 : i32
    return %c0_i32, %c0_i32_0 : i32, i32
  }
  func.func @transform_7(%arg0: i32) -> (i32, i32) {
    %c0_i32 = arith.constant 0 : i32
    %c0_i32_0 = arith.constant 0 : i32
    return %arg0, %c0_i32 : i32, i32
  }
}

</mosaic_0001>

<bundles_post_ra>
// kernel: tpu_custom_call.1
= control target key start
LH: loop header
LB: loop body
LE: loop exit
PB: predicated region body
PF: predicated region fallthrough
CT: control target
= control target key end

     0   :  { %s3337_s0 = inlined_call_operand.hbm [shape: bf16[8,896], index: 0, kind: input, shape index: {}]   ;;  %s3338_s1 = inlined_call_operand.hbm [shape: bf16[896,512], index: 1, kind: input, shape index: {}]   ;;  %s3339_s2 = inlined_call_operand.vmem [shape: f32[1,512], index: 2, kind: input, shape index: {}]   ;;  %s3340_s3 = inlined_call_operand.hbm [shape: bf16[512,256], index: 3, kind: input, shape index: {}]   ;;  %s3341_s4 = inlined_call_operand.vmem [shape: f32[1,256], index: 4, kind: input, shape index: {}]   ;;  %s3342_s5 = inlined_call_operand.vmem [shape: f32[1,256], index: 5, kind: input, shape index: {}]   ;;  %s3343_s6 = inlined_call_operand.<no memory space> [shape: f32[1,1], index: 6, kind: input, shape index: {}]   ;;  %s3344_s7 = inlined_call_operand.vmem [shape: f32[8,1], index: 7, kind: output, shape index: {}]  }
   0x1   :  { %v12_v0 = vstv %s3343_s6 }
   0x2   :  { %13 = vst [vmem:[#allocation2] sm:$0x1] %v12_v0 }
   0x3   :  { %14 = vsyncpa [#allocation4], 0 }
   0x4   :  { %15 = vsyncpa [#allocation6], 0  ;;  %s3180_s26 = smov [#allocation5]   ;;  %s3110_s30 = scalar_lea.hbm %s3338_s1, 28672 }
   0x5   :  { %s31_s27 = sshll.u32 %s3180_s26, 4  ;;  %p3111_p0 = scmp.ne.s32.totalorder %s3338_s1, %s3110_s30  ;;  %s32_s27 = int_to_ptr.vmem [resolvable:$true] %s31_s27 }
   0x6   :  { %p3114_p1 = scmp.lt.u32.totalorder %s3110_s30, %s3338_s1 }
   0x8   :  { %p3116_p2 = pnand %p3114_p1, %p3111_p0 }
   0xa   :  { %3119 = shalt.err (!%p3116_p2)
}
   0xb   :  { %s3120_s6 = scalar_lea.vmem %s32_s27, 28672  ;;  %p3125_p4 = scmp.lt.s32.totalorder %s32_s27, %s32_s27 }
   0xc   :  { %p3121_p3 = scmp.ne.s32.totalorder %s32_s27, %s3120_s6  ;;  %p3126_p5 = scmp.lt.s32.totalorder %s3120_s6, %s3120_s6 }
   0xe   :  { %p3127_p6 = por %p3126_p5, %p3125_p4 }
  0x10   :  { %p3128_p7 = pnand %p3127_p6, %p3121_p3 }
  0x12   :  { %3131 = shalt.err (!%p3128_p7)
}
  0x13   :  { %s3181_s12 = smov 256   ;;  %s3182_s13 = smov 16  }
  0x14   :  { %37 = dma.hbm_to_vmem [thread:$0]  %s3338_s1, 28672, %s32_s27, [#allocation6], %s3181_s12, %s3181_s12, %s3182_s13  }
  0x15   :  { %s3183_s16 = smov [#allocation3]   ;;  %s3184_s18 = smov [#allocation7]  }
  0x16   :  { %s22_s17 = sshll.u32 %s3183_s16, 4  ;;  %s45_s19 = sshll.u32 %s3184_s18, 4  ;;  %s23_s17 = int_to_ptr.vmem [resolvable:$true] %s22_s17  ;;  %s46_s19 = int_to_ptr.vmem [resolvable:$true] %s45_s19 }
  0x17   :  { %s3132_s22 = scalar_lea.hbm %s3337_s0, 448 }
  0x18   :  { %p3133_p8 = scmp.ne.s32.totalorder %s3337_s0, %s3132_s22  ;;  %p3136_p9 = scmp.lt.u32.totalorder %s3132_s22, %s3337_s0 }
  0x1a   :  { %p3138_p10 = pnand %p3136_p9, %p3133_p8 }
  0x1c   :  { %3141 = shalt.err (!%p3138_p10)
}
  0x1d   :  { %s3142_s1 = scalar_lea.vmem %s23_s17, 448  ;;  %p3147_p12 = scmp.lt.s32.totalorder %s23_s17, %s23_s17 }
  0x1e   :  { %p3143_p11 = scmp.ne.s32.totalorder %s23_s17, %s3142_s1  ;;  %p3148_p13 = scmp.lt.s32.totalorder %s3142_s1, %s3142_s1 }
  0x20   :  { %p3149_p0 = por %p3148_p13, %p3147_p12 }
  0x22   :  { %p3150_p1 = pnand %p3149_p0, %p3143_p11 }
  0x24   :  { %3153 = shalt.err (!%p3150_p1)
}
  0x25   :  { %25 = dma.hbm_to_vmem [thread:$0]  %s3337_s0, 448, %s23_s17, [#allocation4]  }
  0x26   :  { %s3154_s8 = scalar_lea.hbm %s3340_s3, 8192 }
  0x27   :  { %p3155_p2 = scmp.ne.s32.totalorder %s3340_s3, %s3154_s8  ;;  %p3158_p3 = scmp.lt.u32.totalorder %s3154_s8, %s3340_s3 }
  0x29   :  { %p3160_p4 = pnand %p3158_p3, %p3155_p2 }
  0x2b   :  { %3163 = shalt.err (!%p3160_p4)
}
  0x2c   :  { %s3164_s12 = scalar_lea.vmem %s46_s19, 8192  ;;  %p3169_p6 = scmp.lt.s32.totalorder %s46_s19, %s46_s19 }
  0x2d   :  { %p3165_p5 = scmp.ne.s32.totalorder %s46_s19, %s3164_s12  ;;  %p3170_p7 = scmp.lt.s32.totalorder %s3164_s12, %s3164_s12 }
  0x2f   :  { %p3171_p8 = por %p3170_p7, %p3169_p6 }
  0x31   :  { %p3172_p9 = pnand %p3171_p8, %p3165_p5 }
  0x33   :  { %3175 = shalt.err (!%p3172_p9)
}
  0x34   :  { %s3185_s0 = smov 128   ;;  %s3186_s13 = smov 8  }
  0x35   :  { %51 = dma.hbm_to_vmem [thread:$0]  %s3340_s3, 8192, %s46_s19, [#allocation6], %s3185_s0, %s3185_s0, %s3186_s13  }
  0x36   :  { %3176 = dma.done.wait [#allocation4], 448  }
  0x37   :  { %3177 = vsyncadd [#allocation4], 4294966848 }
  0x38   :  { %3178 = dma.done.wait [#allocation6], 36864  }
  0x39   :  { %3179 = vsyncadd [#allocation6], 4294930432  ;;  %v2667_v1 = vld [vmem:[#allocation5 + $0x4] ss:$16 sps:$4 sm:$0xff]   ;;  %v2671_v3 = vld [vmem:[#allocation5] ss:$16 sps:$4 sm:$0xff]  }
  0x3a   :  { %v2669_v2 = vld [vmem:[#allocation5 + $0x204] ss:$16 sps:$4 sm:$0xff]   ;;  %1463 = vmatprep.subr.bf16.mxu1 %v2667_v1  ;;  %v2672_v4 = vld [vmem:[#allocation5 + $0x200] ss:$16 sps:$4 sm:$0xff]   ;;  %vm2322_vm6 = vcmask 7168  }
  0x3b   :  { %1504 = vmatprep.subr.bf16.mxu0 %v2669_v2  ;;  %v2673_v5 = vld [vmem:[#allocation5 + $0x24] ss:$16 sps:$4 sm:$0xff]   ;;  %1464 = vmatpush1.bf16.msra.mxu1 %v2671_v3  ;;  %v2677_v7 = vld [vmem:[#allocation5 + $0x20] ss:$16 sps:$4 sm:$0xff]  }
  0x3c   :  { %1505 = vmatpush1.bf16.msra.mxu0 %v2672_v4  ;;  %v2675_v6 = vld [vmem:[#allocation5 + $0x224] ss:$16 sps:$4 sm:$0xff]   ;;  %1465 = vmatprep.subr.bf16.mxu1 %v2673_v5  ;;  %v2678_v8 = vld [vmem:[#allocation5 + $0x220] ss:$16 sps:$4 sm:$0xff]  }
  0x3d   :  { %1506 = vmatprep.subr.bf16.mxu0 %v2675_v6  ;;  %v2679_v9 = vld [vmem:[#allocation5 + $0x44] ss:$16 sps:$4 sm:$0xff]   ;;  %v2683_v11 = vld [vmem:[#allocation5 + $0x40] ss:$16 sps:$4 sm:$0xff]   ;;  %v2772_v6 = vld [vmem:[#allocation5 + $0xc] ss:$16 sps:$4 sm:$0xff]  }
  0x3e   :  { %v2681_v10 = vld [vmem:[#allocation5 + $0x244] ss:$16 sps:$4 sm:$0xff]   ;;  %v2684_v12 = vld [vmem:[#allocation5 + $0x240] ss:$16 sps:$4 sm:$0xff]  }
  0x3f   :  { %1466 = vmatpush1.bf16.msra.mxu1 %v2677_v7  ;;  %v2685_v13 = vld [vmem:[#allocation5 + $0x64] ss:$16 sps:$4 sm:$0xff]   ;;  %v2689_v15 = vld [vmem:[#allocation5 + $0x60] ss:$16 sps:$4 sm:$0xff]  }
  0x40   :  { %1507 = vmatpush1.bf16.msra.mxu0 %v2678_v8  ;;  %1467 = vmatprep.subr.bf16.mxu1 %v2679_v9  ;;  %v2687_v14 = vld [vmem:[#allocation5 + $0x264] ss:$16 sps:$4 sm:$0xff]   ;;  %v2690_v16 = vld [vmem:[#allocation5 + $0x260] ss:$16 sps:$4 sm:$0xff]  }
  0x41   :  { %1508 = vmatprep.subr.bf16.mxu0 %v2681_v10  ;;  %v2691_v17 = vld [vmem:[#allocation5 + $0x84] ss:$16 sps:$4 sm:$0xff]   ;;  %v2695_v19 = vld [vmem:[#allocation5 + $0x80] ss:$16 sps:$4 sm:$0xff]   ;;  %v2770_v10 = vld [vmem:[#allocation5 + $0x8] ss:$16 sps:$4 sm:$0xff]  }
  0x42   :  { %v2693_v18 = vld [vmem:[#allocation5 + $0x284] ss:$16 sps:$4 sm:$0xff]   ;;  %v2696_v20 = vld [vmem:[#allocation5 + $0x280] ss:$16 sps:$4 sm:$0xff]  }
  0x43   :  { %1468 = vmatpush1.bf16.msra.mxu1 %v2683_v11  ;;  %v2697_v21 = vld [vmem:[#allocation5 + $0xa4] ss:$16 sps:$4 sm:$0xff]   ;;  %v2701_v23 = vld [vmem:[#allocation5 + $0xa0] ss:$16 sps:$4 sm:$0xff]  }
  0x44   :  { %1509 = vmatpush1.bf16.msra.mxu0 %v2684_v12  ;;  %1469 = vmatprep.subr.bf16.mxu1 %v2685_v13  ;;  %v2699_v22 = vld [vmem:[#allocation5 + $0x2a4] ss:$16 sps:$4 sm:$0xff]   ;;  %v2702_v24 = vld [vmem:[#allocation5 + $0x2a0] ss:$16 sps:$4 sm:$0xff]   ;;  %v2778_v12 = vld [vmem:[#allocation5 + $0x2c] ss:$16 sps:$4 sm:$0xff]  }
  0x45   :  { %1510 = vmatprep.subr.bf16.mxu0 %v2687_v14  ;;  %v2703_v25 = vld [vmem:[#allocation5 + $0xc4] ss:$16 sps:$4 sm:$0xff]   ;;  %v2707_v27 = vld [vmem:[#allocation5 + $0xc0] ss:$16 sps:$4 sm:$0xff]   ;;  %v2776_v14 = vld [vmem:[#allocation5 + $0x28] ss:$16 sps:$4 sm:$0xff]  }
  0x46   :  { %v2705_v26 = vld [vmem:[#allocation5 + $0x2c4] ss:$16 sps:$4 sm:$0xff]   ;;  %v2708_v28 = vld [vmem:[#allocation5 + $0x2c0] ss:$16 sps:$4 sm:$0xff]  }
  0x47   :  { %1470 = vmatpush1.bf16.msra.mxu1 %v2689_v15  ;;  %v2709_v29 = vld [vmem:[#allocation5 + $0xe4] ss:$16 sps:$4 sm:$0xff]   ;;  %v2713_v31 = vld [vmem:[#allocation5 + $0xe0] ss:$16 sps:$4 sm:$0xff]  }
  0x48   :  { %1511 = vmatpush1.bf16.msra.mxu0 %v2690_v16  ;;  %1471 = vmatprep.subr.bf16.mxu1 %v2691_v17  ;;  %v2711_v30 = vld [vmem:[#allocation5 + $0x2e4] ss:$16 sps:$4 sm:$0xff]   ;;  %v2714_v32 = vld [vmem:[#allocation5 + $0x2e0] ss:$16 sps:$4 sm:$0xff]   ;;  %v2784_v16 = vld [vmem:[#allocation5 + $0x4c] ss:$16 sps:$4 sm:$0xff]  }
  0x49   :  { %1512 = vmatprep.subr.bf16.mxu0 %v2693_v18  ;;  %v2715_v33 = vld [vmem:[#allocation5 + $0x104] ss:$16 sps:$4 sm:$0xff]   ;;  %v2719_v35 = vld [vmem:[#allocation5 + $0x100] ss:$16 sps:$4 sm:$0xff]   ;;  %v2782_v18 = vld [vmem:[#allocation5 + $0x48] ss:$16 sps:$4 sm:$0xff]  }
  0x4a   :  { %v2717_v34 = vld [vmem:[#allocation5 + $0x304] ss:$16 sps:$4 sm:$0xff]   ;;  %v2720_v36 = vld [vmem:[#allocation5 + $0x300] ss:$16 sps:$4 sm:$0xff]  }
  0x4b   :  { %1472 = vmatpush1.bf16.msra.mxu1 %v2695_v19  ;;  %v2721_v37 = vld [vmem:[#allocation5 + $0x124] ss:$16 sps:$4 sm:$0xff]   ;;  %v2725_v39 = vld [vmem:[#allocation5 + $0x120] ss:$16 sps:$4 sm:$0xff]  }
  0x4c   :  { %1513 = vmatpush1.bf16.msra.mxu0 %v2696_v20  ;;  %1473 = vmatprep.subr.bf16.mxu1 %v2697_v21  ;;  %v2723_v38 = vld [vmem:[#allocation5 + $0x324] ss:$16 sps:$4 sm:$0xff]   ;;  %v2726_v40 = vld [vmem:[#allocation5 + $0x320] ss:$16 sps:$4 sm:$0xff]   ;;  %v2790_v20 = vld [vmem:[#allocation5 + $0x6c] ss:$16 sps:$4 sm:$0xff]  }
  0x4d   :  { %1514 = vmatprep.subr.bf16.mxu0 %v2699_v22  ;;  %v2727_v41 = vld [vmem:[#allocation5 + $0x144] ss:$16 sps:$4 sm:$0xff]   ;;  %v2731_v43 = vld [vmem:[#allocation5 + $0x140] ss:$16 sps:$4 sm:$0xff]   ;;  %v2788_v22 = vld [vmem:[#allocation5 + $0x68] ss:$16 sps:$4 sm:$0xff]  }
  0x4e   :  { %v2729_v42 = vld [vmem:[#allocation5 + $0x344] ss:$16 sps:$4 sm:$0xff]   ;;  %v2732_v44 = vld [vmem:[#allocation5 + $0x340] ss:$16 sps:$4 sm:$0xff]  }
  0x4f   :  { %1474 = vmatpush1.bf16.msra.mxu1 %v2701_v23  ;;  %v2733_v45 = vld [vmem:[#allocation5 + $0x164] ss:$16 sps:$4 sm:$0xff]   ;;  %v69_v49 = vld [vmem:[#allocation3 + $0x8] sm:$0xff] }
  0x50   :  { %1515 = vmatpush1.bf16.msra.mxu0 %v2702_v24  ;;  %1475 = vmatprep.subr.bf16.mxu1 %v2703_v25  ;;  %v2735_v46 = vld [vmem:[#allocation5 + $0x364] ss:$16 sps:$4 sm:$0xff]   ;;  %v2737_v50 = vld [vmem:[#allocation5 + $0x160] ss:$16 sps:$4 sm:$0xff]   ;;  %v3269_v52 = vcombine.high %v69_v49, %v69_v49  ;;  %v3275_v8 = vcombine.low %v69_v49, %v69_v49  ;;  %v2796_v24 = vld [vmem:[#allocation5 + $0x8c] ss:$16 sps:$4 sm:$0xff]  }
  0x51   :  { %1516 = vmatprep.subr.bf16.mxu0 %v2705_v26  ;;  %v68_v47 = vld [vmem:[#allocation3] sm:$0xff]  ;;  %v2738_v51 = vld [vmem:[#allocation5 + $0x360] ss:$16 sps:$4 sm:$0xff]  }
  0x52   :  { %v3267_v48 = vcombine.high %v68_v47, %v68_v47  ;;  %v2739_v53 = vld [vmem:[#allocation5 + $0x184] ss:$16 sps:$4 sm:$0xff]   ;;  %1536 = vmatprep.mubr.bf16.mxu0 %v3269_v52  ;;  %v2743_v55 = vld [vmem:[#allocation5 + $0x180] ss:$16 sps:$4 sm:$0xff]   ;;  %v3273_v7 = vcombine.low %v68_v47, %v68_v47  ;;  %v2794_v26 = vld [vmem:[#allocation5 + $0x88] ss:$16 sps:$4 sm:$0xff]  }
  0x53   :  { %1476 = vmatpush1.bf16.msra.mxu1 %v2707_v27  ;;  %v2741_v54 = vld [vmem:[#allocation5 + $0x384] ss:$16 sps:$4 sm:$0xff]   ;;  %v2744_v56 = vld [vmem:[#allocation5 + $0x380] ss:$16 sps:$4 sm:$0xff]  }
  0x54   :  { %1517 = vmatpush1.bf16.msra.mxu0 %v2708_v28  ;;  %1477 = vmatprep.subr.bf16.mxu1 %v2709_v29  ;;  %v2745_v57 = vld [vmem:[#allocation5 + $0x1a4] ss:$16 sps:$4 sm:$0xff]   ;;  %v2749_v59 = vld [vmem:[#allocation5 + $0x1a0] ss:$16 sps:$4 sm:$0xff]   ;;  %v2802_v28 = vld [vmem:[#allocation5 + $0xac] ss:$16 sps:$4 sm:$0xff]  }
  0x55   :  { %1518 = vmatprep.subr.bf16.mxu0 %v2711_v30  ;;  %1495 = vmatprep.mubr.bf16.mxu1 %v3267_v48  ;;  %v2747_v58 = vld [vmem:[#allocation5 + $0x3a4] ss:$16 sps:$4 sm:$0xff]   ;;  %v2750_v60 = vld [vmem:[#allocation5 + $0x3a0] ss:$16 sps:$4 sm:$0xff]   ;;  %v2800_v30 = vld [vmem:[#allocation5 + $0xa8] ss:$16 sps:$4 sm:$0xff]  }
  0x56   :  { %v2751_v61 = vld [vmem:[#allocation5 + $0x1c4] ss:$16 sps:$4 sm:$0xff]   ;;  %v2755_v63 = vld [vmem:[#allocation5 + $0x1c0] ss:$16 sps:$4 sm:$0xff]  }
  0x57   :  { %1478 = vmatpush1.bf16.msra.mxu1 %v2713_v31  ;;  %v2753_v62 = vld [vmem:[#allocation5 + $0x3c4] ss:$16 sps:$4 sm:$0xff]   ;;  %v2756_v0 = vld [vmem:[#allocation5 + $0x3c0] ss:$16 sps:$4 sm:$0xff]  }
  0x58   :  { %1519 = vmatpush1.bf16.msra.mxu0 %v2714_v32  ;;  %1479 = vmatprep.subr.bf16.mxu1 %v2715_v33  ;;  %v2757_v1 = vld [vmem:[#allocation5 + $0x1e4] ss:$16 sps:$4 sm:$0xff]   ;;  %v2761_v3 = vld [vmem:[#allocation5 + $0x1e0] ss:$16 sps:$4 sm:$0xff]   ;;  %v2808_v32 = vld [vmem:[#allocation5 + $0xcc] ss:$16 sps:$4 sm:$0xff]  }
  0x59   :  { %1520 = vmatprep.subr.bf16.mxu0 %v2717_v34  ;;  %v2759_v2 = vld [vmem:[#allocation5 + $0x3e4] ss:$16 sps:$4 sm:$0xff]   ;;  %v2762_v4 = vld [vmem:[#allocation5 + $0x3e0] ss:$16 sps:$4 sm:$0xff]  }
  0x5a   :  { %v2769_v5 = vld [vmem:[#allocation5 + $0x404] ss:$16 sps:$4 sm:$0xff]   ;;  %v2767_v9 = vld [vmem:[#allocation5 + $0x400] ss:$16 sps:$4 sm:$0xff]  }
  0x5b   :  { %1480 = vmatpush1.bf16.msra.mxu1 %v2719_v35  ;;  %v2775_v11 = vld [vmem:[#allocation5 + $0x424] ss:$16 sps:$4 sm:$0xff]   ;;  %v2773_v13 = vld [vmem:[#allocation5 + $0x420] ss:$16 sps:$4 sm:$0xff]  }
  0x5c   :  { %1521 = vmatpush1.bf16.msra.mxu0 %v2720_v36  ;;  %1481 = vmatprep.subr.bf16.mxu1 %v2721_v37  ;;  %v2781_v15 = vld [vmem:[#allocation5 + $0x444] ss:$16 sps:$4 sm:$0xff]   ;;  %v2779_v17 = vld [vmem:[#allocation5 + $0x440] ss:$16 sps:$4 sm:$0xff]   ;;  %v2806_v36 = vld [vmem:[#allocation5 + $0xc8] ss:$16 sps:$4 sm:$0xff]  }
  0x5d   :  { %1522 = vmatprep.subr.bf16.mxu0 %v2723_v38  ;;  %v2787_v19 = vld [vmem:[#allocation5 + $0x464] ss:$16 sps:$4 sm:$0xff]   ;;  %v2785_v21 = vld [vmem:[#allocation5 + $0x460] ss:$16 sps:$4 sm:$0xff]   ;;  %v2814_v38 = vld [vmem:[#allocation5 + $0xec] ss:$16 sps:$4 sm:$0xff]  }
  0x5e   :  { %v2793_v23 = vld [vmem:[#allocation5 + $0x484] ss:$16 sps:$4 sm:$0xff]   ;;  %v2791_v25 = vld [vmem:[#allocation5 + $0x480] ss:$16 sps:$4 sm:$0xff]  }
  0x5f   :  { %1482 = vmatpush1.bf16.msra.mxu1 %v2725_v39  ;;  %v2799_v27 = vld [vmem:[#allocation5 + $0x4a4] ss:$16 sps:$4 sm:$0xff]   ;;  %v2797_v29 = vld [vmem:[#allocation5 + $0x4a0] ss:$16 sps:$4 sm:$0xff]  }
  0x60   :  { %1523 = vmatpush1.bf16.msra.mxu0 %v2726_v40  ;;  %1483 = vmatprep.subr.bf16.mxu1 %v2727_v41  ;;  %v2805_v31 = vld [vmem:[#allocation5 + $0x4c4] ss:$16 sps:$4 sm:$0xff]   ;;  %v2803_v34 = vld [vmem:[#allocation5 + $0x4c0] ss:$16 sps:$4 sm:$0xff]   ;;  %v2812_v40 = vld [vmem:[#allocation5 + $0xe8] ss:$16 sps:$4 sm:$0xff]  }
  0x61   :  { %1524 = vmatprep.subr.bf16.mxu0 %v2729_v42  ;;  %v3280_v33 = vld [vmem:[#allocation3 + $0x10] sm:$0xff]  ;;  %v2809_v39 = vld [vmem:[#allocation5 + $0x4e0] ss:$16 sps:$4 sm:$0xff]   ;;  %v2820_v42 = vld [vmem:[#allocation5 + $0x10c] ss:$16 sps:$4 sm:$0xff]  }
  0x62   :  { %v3284_v35 = vcombine.high %v3280_v33, %v3280_v33  ;;  %v2811_v37 = vld [vmem:[#allocation5 + $0x4e4] ss:$16 sps:$4 sm:$0xff]   ;;  %v2821_v47 = vld [vmem:[#allocation5 + $0x520] ss:$16 sps:$4 sm:$0xff]  }
  0x63   :  { %1484 = vmatpush1.bf16.msra.mxu1 %v2731_v43  ;;  %v2817_v41 = vld [vmem:[#allocation5 + $0x504] ss:$16 sps:$4 sm:$0xff]   ;;  %v2815_v43 = vld [vmem:[#allocation5 + $0x500] ss:$16 sps:$4 sm:$0xff]  }
  0x64   :  { %1525 = vmatpush1.bf16.msra.mxu0 %v2732_v44  ;;  %1485 = vmatprep.subr.bf16.mxu1 %v2733_v45  ;;  %v2818_v44 = vld [vmem:[#allocation5 + $0x108] ss:$16 sps:$4 sm:$0xff]   ;;  %v2823_v45 = vld [vmem:[#allocation5 + $0x524] ss:$16 sps:$4 sm:$0xff]  }
  0x65   :  { %1526 = vmatprep.subr.bf16.mxu0 %v2735_v46  ;;  %v2826_v46 = vld [vmem:[#allocation5 + $0x12c] ss:$16 sps:$4 sm:$0xff]   ;;  %v2829_v49 = vld [vmem:[#allocation5 + $0x544] ss:$16 sps:$4 sm:$0xff]  }
  0x67   :  { %1486 = vmatpush1.bf16.msra.mxu1 %v2737_v50  ;;  %v2832_v50 = vld [vmem:[#allocation5 + $0x14c] ss:$16 sps:$4 sm:$0xff]  }
  0x68   :  { %1527 = vmatpush1.bf16.msra.mxu0 %v2738_v51  ;;  %1487 = vmatprep.subr.bf16.mxu1 %v2739_v53  ;;  %v2827_v51 = vld [vmem:[#allocation5 + $0x540] ss:$16 sps:$4 sm:$0xff]   ;;  %v2830_v53 = vld [vmem:[#allocation5 + $0x148] ss:$16 sps:$4 sm:$0xff]  }
  0x69   :  { %1528 = vmatprep.subr.bf16.mxu0 %v2741_v54  ;;  %v2835_v54 = vld [vmem:[#allocation5 + $0x564] ss:$16 sps:$4 sm:$0xff]  }
  0x6b   :  { %1488 = vmatpush1.bf16.msra.mxu1 %v2743_v55  ;;  %v2838_v55 = vld [vmem:[#allocation5 + $0x16c] ss:$16 sps:$4 sm:$0xff]  }
  0x6c   :  { %1529 = vmatpush1.bf16.msra.mxu0 %v2744_v56  ;;  %1489 = vmatprep.subr.bf16.mxu1 %v2745_v57  ;;  %v2833_v56 = vld [vmem:[#allocation5 + $0x560] ss:$16 sps:$4 sm:$0xff]   ;;  %v2836_v57 = vld [vmem:[#allocation5 + $0x168] ss:$16 sps:$4 sm:$0xff]  }
  0x6d   :  { %1530 = vmatprep.subr.bf16.mxu0 %v2747_v58  ;;  %v2841_v58 = vld [vmem:[#allocation5 + $0x584] ss:$16 sps:$4 sm:$0xff]  }
  0x6f   :  { %1490 = vmatpush1.bf16.msra.mxu1 %v2749_v59  ;;  %v2844_v59 = vld [vmem:[#allocation5 + $0x18c] ss:$16 sps:$4 sm:$0xff]  }
  0x70   :  { %1531 = vmatpush1.bf16.msra.mxu0 %v2750_v60  ;;  %1491 = vmatprep.subr.bf16.mxu1 %v2751_v61  ;;  %v2839_v60 = vld [vmem:[#allocation5 + $0x580] ss:$16 sps:$4 sm:$0xff]   ;;  %v2842_v61 = vld [vmem:[#allocation5 + $0x188] ss:$16 sps:$4 sm:$0xff]  }
  0x71   :  { %1532 = vmatprep.subr.bf16.mxu0 %v2753_v62  ;;  %v2847_v62 = vld [vmem:[#allocation5 + $0x5a4] ss:$16 sps:$4 sm:$0xff]  }
  0x73   :  { %1492 = vmatpush1.bf16.msra.mxu1 %v2755_v63  ;;  %v2850_v63 = vld [vmem:[#allocation5 + $0x1ac] ss:$16 sps:$4 sm:$0xff]  }
  0x74   :  { %1533 = vmatpush1.bf16.msra.mxu0 %v2756_v0  ;;  %1493 = vmatprep.subr.bf16.mxu1 %v2757_v1  ;;  %v2845_v0 = vld [vmem:[#allocation5 + $0x5a0] ss:$16 sps:$4 sm:$0xff]   ;;  %v2848_v1 = vld [vmem:[#allocation5 + $0x1a8] ss:$16 sps:$4 sm:$0xff]  }
  0x75   :  { %1534 = vmatprep.subr.bf16.mxu0 %v2759_v2  ;;  %v2853_v2 = vld [vmem:[#allocation5 + $0x5c4] ss:$16 sps:$4 sm:$0xff]  }
  0x77   :  { %1494 = vmatpush1.bf16.msra.mxu1 %v2761_v3  ;;  %v2856_v3 = vld [vmem:[#allocation5 + $0x1cc] ss:$16 sps:$4 sm:$0xff]  }
  0x78   :  { %1535 = vmatpush1.bf16.msra.mxu0 %v2762_v4  ;;  %1627 = vmatprep.subr.bf16.mxu1 %v2772_v6  ;;  %v2851_v4 = vld [vmem:[#allocation5 + $0x5c0] ss:$16 sps:$4 sm:$0xff]   ;;  %v2859_v6 = vld [vmem:[#allocation5 + $0x5e4] ss:$16 sps:$4 sm:$0xff]  }
  0x79   :  { %1545 = vmatprep.subr.bf16.mxu0 %v2769_v5  ;;  %v2854_v5 = vld [vmem:[#allocation5 + $0x1c8] ss:$16 sps:$4 sm:$0xff]  }
  0x7a   :  { %1496 = vmatmul.mubr.bf16.vlgmr.msra.gmra.mrb[0].mxu1 %v3273_v7 }
  0x7b   :  { %1537 = vmatmul.mubr.bf16.vlgmr.msra.gmra.mrb[0].mxu0 %v3275_v8  ;;  %1628 = vmatpush1.bf16.msra.mxu1 %v2770_v10  ;;  %v2857_v10 = vld [vmem:[#allocation5 + $0x5e0] ss:$16 sps:$4 sm:$0xff]  }
  0x7c   :  { %1546 = vmatpush1.bf16.msra.mxu0 %v2767_v9  ;;  %1629 = vmatprep.subr.bf16.mxu1 %v2778_v12  ;;  %v2862_v9 = vld [vmem:[#allocation5 + $0x1ec] ss:$16 sps:$4 sm:$0xff]   ;;  %v2867_v12 = vld [vmem:[#allocation5 + $0x604] ss:$16 sps:$4 sm:$0xff]  }
  0x7d   :  { %1547 = vmatprep.subr.bf16.mxu0 %v2775_v11  ;;  %1659 = vmatprep.mubr.bf16.mxu1 %v3267_v48  ;;  %v2824_v48 = vld [vmem:[#allocation5 + $0x128] ss:$16 sps:$4 sm:$0xff]  }
  0x7e   :  { %1577 = vmatprep.mubr.bf16.mxu0 %v3284_v35  ;;  %v2860_v11 = vld [vmem:[#allocation5 + $0x1e8] ss:$16 sps:$4 sm:$0xff]  }
  0x7f   :  { %1630 = vmatpush1.bf16.msra.mxu1 %v2776_v14  ;;  %v3289_v14 = vcombine.low %v3280_v33, %v3280_v33  ;;  %v2900_v33 = vld [vmem:[#allocation5 + $0x2ac] ss:$16 sps:$4 sm:$0xff]  }
  0x80   :  { %1548 = vmatpush1.bf16.msra.mxu0 %v2773_v13  ;;  %1631 = vmatprep.subr.bf16.mxu1 %v2784_v16  ;;  %v2870_v13 = vld [vmem:[#allocation5 + $0x20c] ss:$16 sps:$4 sm:$0xff]   ;;  %v2868_v16 = vld [vmem:[#allocation5 + $0x208] ss:$16 sps:$4 sm:$0xff]  }
  0x81   :  { %1549 = vmatprep.subr.bf16.mxu0 %v2781_v15  ;;  %v2865_v15 = vld [vmem:[#allocation5 + $0x600] ss:$16 sps:$4 sm:$0xff]  }
  0x83   :  { %1632 = vmatpush1.bf16.msra.mxu1 %v2782_v18  ;;  %v2876_v18 = vld [vmem:[#allocation5 + $0x22c] ss:$16 sps:$4 sm:$0xff]  }
  0x84   :  { %1550 = vmatpush1.bf16.msra.mxu0 %v2779_v17  ;;  %1633 = vmatprep.subr.bf16.mxu1 %v2790_v20  ;;  %v2873_v17 = vld [vmem:[#allocation5 + $0x624] ss:$16 sps:$4 sm:$0xff]   ;;  %v2874_v20 = vld [vmem:[#allocation5 + $0x228] ss:$16 sps:$4 sm:$0xff]  }
  0x85   :  { %1551 = vmatprep.subr.bf16.mxu0 %v2787_v19  ;;  %v2871_v19 = vld [vmem:[#allocation5 + $0x620] ss:$16 sps:$4 sm:$0xff]  }
  0x87   :  { %1634 = vmatpush1.bf16.msra.mxu1 %v2788_v22  ;;  %v2882_v22 = vld [vmem:[#allocation5 + $0x24c] ss:$16 sps:$4 sm:$0xff]  }
  0x88   :  { %1552 = vmatpush1.bf16.msra.mxu0 %v2785_v21  ;;  %1635 = vmatprep.subr.bf16.mxu1 %v2796_v24  ;;  %v2879_v21 = vld [vmem:[#allocation5 + $0x644] ss:$16 sps:$4 sm:$0xff]   ;;  %v2877_v24 = vld [vmem:[#allocation5 + $0x640] ss:$16 sps:$4 sm:$0xff]  }
  0x89   :  { %1553 = vmatprep.subr.bf16.mxu0 %v2793_v23  ;;  %v3187_v23 = vmov 0  }
  0x8b   :  { %1636 = vmatpush1.bf16.msra.mxu1 %v2794_v26  ;;  %v2888_v26 = vld [vmem:[#allocation5 + $0x26c] ss:$16 sps:$4 sm:$0xff]  }
  0x8c   :  { %1554 = vmatpush1.bf16.msra.mxu0 %v2791_v25  ;;  %1637 = vmatprep.subr.bf16.mxu1 %v2802_v28  ;;  %v2880_v25 = vld [vmem:[#allocation5 + $0x248] ss:$16 sps:$4 sm:$0xff]  }
  0x8d   :  { %1555 = vmatprep.subr.bf16.mxu0 %v2799_v27  ;;  %v2883_v27 = vld [vmem:[#allocation5 + $0x660] ss:$16 sps:$4 sm:$0xff]   ;;  %v2886_v28 = vld [vmem:[#allocation5 + $0x268] ss:$16 sps:$4 sm:$0xff]  }
  0x8f   :  { %1638 = vmatpush1.bf16.msra.mxu1 %v2800_v30  ;;  %v2894_v30 = vld [vmem:[#allocation5 + $0x28c] ss:$16 sps:$4 sm:$0xff]  }
  0x90   :  { %1556 = vmatpush1.bf16.msra.mxu0 %v2797_v29  ;;  %1639 = vmatprep.subr.bf16.mxu1 %v2808_v32  ;;  %v2891_v29 = vld [vmem:[#allocation5 + $0x684] ss:$16 sps:$4 sm:$0xff]  }
  0x91   :  { %1557 = vmatprep.subr.bf16.mxu0 %v2805_v31  ;;  %v2889_v31 = vld [vmem:[#allocation5 + $0x680] ss:$16 sps:$4 sm:$0xff]   ;;  %v2897_v32 = vld [vmem:[#allocation5 + $0x6a4] ss:$16 sps:$4 sm:$0xff]  }
  0x93   :  { %1640 = vmatpush1.bf16.msra.mxu1 %v2806_v36  ;;  %v2898_v36 = vld [vmem:[#allocation5 + $0x2a8] ss:$16 sps:$4 sm:$0xff]  }
  0x94   :  { %1558 = vmatpush1.bf16.msra.mxu0 %v2803_v34  ;;  %1641 = vmatprep.subr.bf16.mxu1 %v2814_v38  ;;  %v2895_v34 = vld [vmem:[#allocation5 + $0x6a0] ss:$16 sps:$4 sm:$0xff]   ;;  %v2906_v38 = vld [vmem:[#allocation5 + $0x2cc] ss:$16 sps:$4 sm:$0xff]  }
  0x95   :  { %1559 = vmatprep.subr.bf16.mxu0 %v2811_v37  ;;  %v2903_v37 = vld [vmem:[#allocation5 + $0x6c4] ss:$16 sps:$4 sm:$0xff]  }
  0x97   :  { %1642 = vmatpush1.bf16.msra.mxu1 %v2812_v40  ;;  %v2904_v40 = vld [vmem:[#allocation5 + $0x2c8] ss:$16 sps:$4 sm:$0xff]  }
  0x98   :  { %1560 = vmatpush1.bf16.msra.mxu0 %v2809_v39  ;;  %1643 = vmatprep.subr.bf16.mxu1 %v2820_v42  ;;  %v2901_v39 = vld [vmem:[#allocation5 + $0x6c0] ss:$16 sps:$4 sm:$0xff]   ;;  %v2912_v42 = vld [vmem:[#allocation5 + $0x2ec] ss:$16 sps:$4 sm:$0xff]  }
  0x99   :  { %1561 = vmatprep.subr.bf16.mxu0 %v2817_v41  ;;  %v2909_v41 = vld [vmem:[#allocation5 + $0x6e4] ss:$16 sps:$4 sm:$0xff]  }
  0x9b   :  { %1644 = vmatpush1.bf16.msra.mxu1 %v2818_v44  ;;  %v2910_v44 = vld [vmem:[#allocation5 + $0x2e8] ss:$16 sps:$4 sm:$0xff]  }
  0x9c   :  { %1562 = vmatpush1.bf16.msra.mxu0 %v2815_v43  ;;  %1645 = vmatprep.subr.bf16.mxu1 %v2826_v46  ;;  %v2907_v43 = vld [vmem:[#allocation5 + $0x6e0] ss:$16 sps:$4 sm:$0xff]   ;;  %v3295_v46 = vld [vmem:[#allocation3 + $0x18] ss:$0 sps:$4 sm:$0xff]  }
  0x9d   :  { %1563 = vmatprep.subr.bf16.mxu0 %v2823_v45  ;;  %v2916_v45 = vld [vmem:[#allocation5 + $0x30c] ss:$16 sps:$4 sm:$0xff]  }
  0x9f   :  { %1646 = vmatpush1.bf16.msra.mxu1 %v2824_v48  ;;  %v2919_v48 = vld [vmem:[#allocation5 + $0x32c] ss:$16 sps:$4 sm:$0xff]  }
  0xa0   :  { %1564 = vmatpush1.bf16.msra.mxu0 %v2821_v47  ;;  %1647 = vmatprep.subr.bf16.mxu1 %v2832_v50  ;;  %v2914_v47 = vld [vmem:[#allocation5 + $0x308] ss:$16 sps:$4 sm:$0xff]   ;;  %v3012_v50 = vld [vmem:[#allocation7 + $0x4] ss:$8 sps:$4 sm:$0xff]  }
  0xa1   :  { %1565 = vmatprep.subr.bf16.mxu0 %v2829_v49  ;;  %v3010_v49 = vld [vmem:[#allocation7] ss:$8 sps:$4 sm:$0xff]  }
  0xa3   :  { %1648 = vmatpush1.bf16.msra.mxu1 %v2830_v53  ;;  %v3015_v53 = vld [vmem:[#allocation7 + $0x14] ss:$8 sps:$4 sm:$0xff]  }
  0xa4   :  { %1566 = vmatpush1.bf16.msra.mxu0 %v2827_v51  ;;  %1649 = vmatprep.subr.bf16.mxu1 %v2838_v55  ;;  %v2917_v51 = vld [vmem:[#allocation5 + $0x328] ss:$16 sps:$4 sm:$0xff]  }
  0xa5   :  { %1567 = vmatprep.subr.bf16.mxu0 %v2835_v54  ;;  %v2922_v54 = vld [vmem:[#allocation5 + $0x34c] ss:$16 sps:$4 sm:$0xff]   ;;  %v3013_v55 = vld [vmem:[#allocation7 + $0x10] ss:$8 sps:$4 sm:$0xff]  }
  0xa7   :  { %1650 = vmatpush1.bf16.msra.mxu1 %v2836_v57  ;;  %v2920_v57 = vld [vmem:[#allocation5 + $0x348] ss:$16 sps:$4 sm:$0xff]  }
  0xa8   :  { %1568 = vmatpush1.bf16.msra.mxu0 %v2833_v56  ;;  %1651 = vmatprep.subr.bf16.mxu1 %v2844_v59  ;;  %v3018_v56 = vld [vmem:[#allocation7 + $0x24] ss:$8 sps:$4 sm:$0xff]   ;;  %v3016_v59 = vld [vmem:[#allocation7 + $0x20] ss:$8 sps:$4 sm:$0xff]  }
  0xa9   :  { %1569 = vmatprep.subr.bf16.mxu0 %v2841_v58  ;;  %v2925_v58 = vld [vmem:[#allocation5 + $0x36c] ss:$16 sps:$4 sm:$0xff]  }
  0xab   :  { %1652 = vmatpush1.bf16.msra.mxu1 %v2842_v61  ;;  %v2928_v61 = vld [vmem:[#allocation5 + $0x38c] ss:$16 sps:$4 sm:$0xff]  }
  0xac   :  { %1570 = vmatpush1.bf16.msra.mxu0 %v2839_v60  ;;  %1653 = vmatprep.subr.bf16.mxu1 %v2850_v63  ;;  %v2923_v60 = vld [vmem:[#allocation5 + $0x368] ss:$16 sps:$4 sm:$0xff]  }
  0xad   :  { %1571 = vmatprep.subr.bf16.mxu0 %v2847_v62  ;;  %v3021_v62 = vld [vmem:[#allocation7 + $0x34] ss:$8 sps:$4 sm:$0xff]   ;;  %v3019_v63 = vld [vmem:[#allocation7 + $0x30] ss:$8 sps:$4 sm:$0xff]  }
  0xaf   :  { %1654 = vmatpush1.bf16.msra.mxu1 %v2848_v1  ;;  %v2926_v1 = vld [vmem:[#allocation5 + $0x388] ss:$16 sps:$4 sm:$0xff]  }
  0xb0   :  { %1572 = vmatpush1.bf16.msra.mxu0 %v2845_v0  ;;  %1655 = vmatprep.subr.bf16.mxu1 %v2856_v3  ;;  %v3024_v0 = vld [vmem:[#allocation7 + $0x44] ss:$8 sps:$4 sm:$0xff]   ;;  %v3022_v3 = vld [vmem:[#allocation7 + $0x40] ss:$8 sps:$4 sm:$0xff]  }
  0xb1   :  { %1573 = vmatprep.subr.bf16.mxu0 %v2853_v2  ;;  %v2931_v2 = vld [vmem:[#allocation5 + $0x3ac] ss:$16 sps:$4 sm:$0xff]  }
  0xb3   :  { %1656 = vmatpush1.bf16.msra.mxu1 %v2854_v5  ;;  %v2929_v5 = vld [vmem:[#allocation5 + $0x3a8] ss:$16 sps:$4 sm:$0xff]  }
  0xb4   :  { %1574 = vmatpush1.bf16.msra.mxu0 %v2851_v4  ;;  %1657 = vmatprep.subr.bf16.mxu1 %v2862_v9  ;;  %v3027_v4 = vld [vmem:[#allocation7 + $0x54] ss:$8 sps:$4 sm:$0xff]   ;;  %v3025_v9 = vld [vmem:[#allocation7 + $0x50] ss:$8 sps:$4 sm:$0xff]  }
  0xb5   :  { %1575 = vmatprep.subr.bf16.mxu0 %v2859_v6  ;;  %v2934_v6 = vld [vmem:[#allocation5 + $0x3cc] ss:$16 sps:$4 sm:$0xff]  }
  0xb7   :  { %1658 = vmatpush1.bf16.msra.mxu1 %v2860_v11  ;;  %v2932_v11 = vld [vmem:[#allocation5 + $0x3c8] ss:$16 sps:$4 sm:$0xff]  }
  0xb8   :  { %1576 = vmatpush1.bf16.msra.mxu0 %v2857_v10  ;;  %1668 = vmatprep.subr.bf16.mxu1 %v2870_v13  ;;  %v3030_v10 = vld [vmem:[#allocation7 + $0x64] ss:$8 sps:$4 sm:$0xff]   ;;  %v3028_v13 = vld [vmem:[#allocation7 + $0x60] ss:$8 sps:$4 sm:$0xff]  }
  0xb9   :  { %1586 = vmatprep.subr.bf16.mxu0 %v2867_v12  ;;  %v2937_v12 = vld [vmem:[#allocation5 + $0x3ec] ss:$16 sps:$4 sm:$0xff]  }
  0xba   :  { %1660 = vmatmul.mubr.bf16.vlgmr.msra.gmra.mrb[4].mxu1 %v3273_v7  ;;  %v2885_v7 = vld [vmem:[#allocation5 + $0x664] ss:$16 sps:$4 sm:$0xff]  }
  0xbb   :  { %1578 = vmatmul.mubr.bf16.vlgmr.msra.gmra.mrb[0].mxu0 %v3289_v14  ;;  %1669 = vmatpush1.bf16.msra.mxu1 %v2868_v16  ;;  %v2935_v16 = vld [vmem:[#allocation5 + $0x3e8] ss:$16 sps:$4 sm:$0xff]  }
  0xbc   :  { %1587 = vmatpush1.bf16.msra.mxu0 %v2865_v15  ;;  %1670 = vmatprep.subr.bf16.mxu1 %v2876_v18  ;;  %v3033_v15 = vld [vmem:[#allocation7 + $0x74] ss:$8 sps:$4 sm:$0xff]   ;;  %v3031_v18 = vld [vmem:[#allocation7 + $0x70] ss:$8 sps:$4 sm:$0xff]  }
  0xbd   :  { %1588 = vmatprep.subr.bf16.mxu0 %v2873_v17  ;;  %1618 = vmatprep.mubr.bf16.mxu0 %v3187_v23  ;;  %v2940_v17 = vld [vmem:[#allocation5 + $0x40c] ss:$16 sps:$4 sm:$0xff]  }
  0xbe   :  { %1700 = vmatprep.mubr.bf16.mxu1 %v3269_v52  ;;  %v2892_v52 = vld [vmem:[#allocation5 + $0x288] ss:$16 sps:$4 sm:$0xff]  }
  0xbf   :  { %1671 = vmatpush1.bf16.msra.mxu1 %v2874_v20  ;;  %v2938_v20 = vld [vmem:[#allocation5 + $0x408] ss:$16 sps:$4 sm:$0xff]  }
  0xc0   :  { %1589 = vmatpush1.bf16.msra.mxu0 %v2871_v19  ;;  %1672 = vmatprep.subr.bf16.mxu1 %v2882_v22  ;;  %v3036_v19 = vld [vmem:[#allocation7 + $0x84] ss:$8 sps:$4 sm:$0xff]   ;;  %v3034_v22 = vld [vmem:[#allocation7 + $0x80] ss:$8 sps:$4 sm:$0xff]  }
  0xc1   :  { %1590 = vmatprep.subr.bf16.mxu0 %v2879_v21  ;;  %v2943_v21 = vld [vmem:[#allocation5 + $0x42c] ss:$16 sps:$4 sm:$0xff]  }
  0xc3   :  { %1673 = vmatpush1.bf16.msra.mxu1 %v2880_v25  ;;  %v2941_v25 = vld [vmem:[#allocation5 + $0x428] ss:$16 sps:$4 sm:$0xff]  }
  0xc4   :  { %1591 = vmatpush1.bf16.msra.mxu0 %v2877_v24  ;;  %1674 = vmatprep.subr.bf16.mxu1 %v2888_v26  ;;  %v3039_v24 = vld [vmem:[#allocation7 + $0x94] ss:$8 sps:$4 sm:$0xff]   ;;  %v3037_v26 = vld [vmem:[#allocation7 + $0x90] ss:$8 sps:$4 sm:$0xff]  }
  0xc5   :  { %1592 = vmatprep.subr.bf16.mxu0 %v2885_v7  ;;  %v2946_v7 = vld [vmem:[#allocation5 + $0x44c] ss:$16 sps:$4 sm:$0xff]  }
  0xc7   :  { %1675 = vmatpush1.bf16.msra.mxu1 %v2886_v28  ;;  %v2944_v28 = vld [vmem:[#allocation5 + $0x448] ss:$16 sps:$4 sm:$0xff]  }
  0xc8   :  { %1593 = vmatpush1.bf16.msra.mxu0 %v2883_v27  ;;  %1676 = vmatprep.subr.bf16.mxu1 %v2894_v30  ;;  %v3042_v27 = vld [vmem:[#allocation7 + $0xa4] ss:$8 sps:$4 sm:$0xff]   ;;  %v3040_v30 = vld [vmem:[#allocation7 + $0xa0] ss:$8 sps:$4 sm:$0xff]  }
  0xc9   :  { %1594 = vmatprep.subr.bf16.mxu0 %v2891_v29  ;;  %v2949_v29 = vld [vmem:[#allocation5 + $0x46c] ss:$16 sps:$4 sm:$0xff]  }
  0xcb   :  { %1677 = vmatpush1.bf16.msra.mxu1 %v2892_v52  ;;  %v2952_v52 = vld [vmem:[#allocation5 + $0x48c] ss:$16 sps:$4 sm:$0xff]  }
  0xcc   :  { %1595 = vmatpush1.bf16.msra.mxu0 %v2889_v31  ;;  %1678 = vmatprep.subr.bf16.mxu1 %v2900_v33  ;;  %v2947_v31 = vld [vmem:[#allocation5 + $0x468] ss:$16 sps:$4 sm:$0xff]  }
  0xcd   :  { %1596 = vmatprep.subr.bf16.mxu0 %v2897_v32  ;;  %v3048_v32 = vld [vmem:[#allocation7 + $0xc4] ss:$8 sps:$4 sm:$0xff]   ;;  %v2950_v33 = vld [vmem:[#allocation5 + $0x488] ss:$16 sps:$4 sm:$0xff]  }
  0xcf   :  { %1679 = vmatpush1.bf16.msra.mxu1 %v2898_v36  ;;  %v3046_v36 = vld [vmem:[#allocation7 + $0xc0] ss:$8 sps:$4 sm:$0xff]  }
  0xd0   :  { %1597 = vmatpush1.bf16.msra.mxu0 %v2895_v34  ;;  %1680 = vmatprep.subr.bf16.mxu1 %v2906_v38  ;;  %v2955_v34 = vld [vmem:[#allocation5 + $0x4ac] ss:$16 sps:$4 sm:$0xff]   ;;  %v2953_v38 = vld [vmem:[#allocation5 + $0x4a8] ss:$16 sps:$4 sm:$0xff]  }
  0xd1   :  { %1598 = vmatprep.subr.bf16.mxu0 %v2903_v37  ;;  %v3051_v37 = vld [vmem:[#allocation7 + $0xd4] ss:$8 sps:$4 sm:$0xff]  }
  0xd3   :  { %1681 = vmatpush1.bf16.msra.mxu1 %v2904_v40  ;;  %v3049_v40 = vld [vmem:[#allocation7 + $0xd0] ss:$8 sps:$4 sm:$0xff]  }
  0xd4   :  { %1599 = vmatpush1.bf16.msra.mxu0 %v2901_v39  ;;  %1682 = vmatprep.subr.bf16.mxu1 %v2912_v42  ;;  %v2958_v39 = vld [vmem:[#allocation5 + $0x4cc] ss:$16 sps:$4 sm:$0xff]  }
  0xd5   :  { %1600 = vmatprep.subr.bf16.mxu0 %v2909_v41  ;;  %v2956_v41 = vld [vmem:[#allocation5 + $0x4c8] ss:$16 sps:$4 sm:$0xff]   ;;  %v2961_v42 = vld [vmem:[#allocation5 + $0x4ec] ss:$16 sps:$4 sm:$0xff]  }
  0xd7   :  { %1683 = vmatpush1.bf16.msra.mxu1 %v2910_v44  ;;  %v2964_v44 = vld [vmem:[#allocation5 + $0x50c] ss:$16 sps:$4 sm:$0xff]  }
  0xd8   :  { %1601 = vmatpush1.bf16.msra.mxu0 %v2907_v43  ;;  %1684 = vmatprep.subr.bf16.mxu1 %v2916_v45  ;;  %v2959_v43 = vld [vmem:[#allocation5 + $0x4e8] ss:$16 sps:$4 sm:$0xff]  }
  0xd9   :  { %2203 = vmatprep.subr.bf16.mxu0 %v3012_v50  ;;  %v2962_v45 = vld [vmem:[#allocation5 + $0x508] ss:$16 sps:$4 sm:$0xff]  }
  0xda   :  { %v2968_v50 = vld [vmem:[#allocation5 + $0x548] ss:$16 sps:$4 sm:$0xff]  }
  0xdb   :  { %1619 = vmatmul.mubr.bf16.vlgmr.msra.gmra.mrb[0].mxu0 %v3295_v46  ;;  %1685 = vmatpush1.bf16.msra.mxu1 %v2914_v47  ;;  %v2967_v47 = vld [vmem:[#allocation5 + $0x52c] ss:$16 sps:$4 sm:$0xff]  }
  0xdc   :  { %1686 = vmatprep.subr.bf16.mxu1 %v2919_v48  ;;  %2204 = vmatpush1.bf16.msra.mxu0 %v3010_v49  ;;  %v2965_v48 = vld [vmem:[#allocation5 + $0x528] ss:$16 sps:$4 sm:$0xff]   ;;  %v2970_v49 = vld [vmem:[#allocation5 + $0x54c] ss:$16 sps:$4 sm:$0xff]  }
  0xdd   :  { %2205 = vmatprep.subr.bf16.mxu0 %v3015_v53  ;;  %v2971_v53 = vld [vmem:[#allocation5 + $0x568] ss:$16 sps:$4 sm:$0xff]  }
  0xdf   :  { %1687 = vmatpush1.bf16.msra.mxu1 %v2917_v51  ;;  %v2973_v51 = vld [vmem:[#allocation5 + $0x56c] ss:$16 sps:$4 sm:$0xff]  }
  0xe0   :  { %1688 = vmatprep.subr.bf16.mxu1 %v2922_v54  ;;  %2206 = vmatpush1.bf16.msra.mxu0 %v3013_v55  ;;  %v2976_v54 = vld [vmem:[#allocation5 + $0x58c] ss:$16 sps:$4 sm:$0xff]   ;;  %v2974_v55 = vld [vmem:[#allocation5 + $0x588] ss:$16 sps:$4 sm:$0xff]  }
  0xe1   :  { %2207 = vmatprep.subr.bf16.mxu0 %v3018_v56  ;;  %v2979_v56 = vld [vmem:[#allocation5 + $0x5ac] ss:$16 sps:$4 sm:$0xff]  }
  0xe3   :  { %1689 = vmatpush1.bf16.msra.mxu1 %v2920_v57  ;;  %v2977_v57 = vld [vmem:[#allocation5 + $0x5a8] ss:$16 sps:$4 sm:$0xff]  }
  0xe4   :  { %1690 = vmatprep.subr.bf16.mxu1 %v2925_v58  ;;  %2208 = vmatpush1.bf16.msra.mxu0 %v3016_v59  ;;  %v2982_v58 = vld [vmem:[#allocation5 + $0x5cc] ss:$16 sps:$4 sm:$0xff]  }
  0xe5   :  { %2209 = vmatprep.subr.bf16.mxu0 %v3021_v62  ;;  %v3054_v59 = vld [vmem:[#allocation7 + $0xe4] ss:$8 sps:$4 sm:$0xff]  }
  0xe6   :  { %v2985_v62 = vld [vmem:[#allocation5 + $0x5ec] ss:$16 sps:$4 sm:$0xff]  }
  0xe7   :  { %1691 = vmatpush1.bf16.msra.mxu1 %v2923_v60  ;;  %v3052_v60 = vld [vmem:[#allocation7 + $0xe0] ss:$8 sps:$4 sm:$0xff]  }
  0xe8   :  { %1692 = vmatprep.subr.bf16.mxu1 %v2928_v61  ;;  %2210 = vmatpush1.bf16.msra.mxu0 %v3019_v63  ;;  %v2980_v61 = vld [vmem:[#allocation5 + $0x5c8] ss:$16 sps:$4 sm:$0xff]   ;;  %v3057_v63 = vld [vmem:[#allocation7 + $0xf4] ss:$8 sps:$4 sm:$0xff]  }
  0xe9   :  { %2211 = vmatprep.subr.bf16.mxu0 %v3024_v0  ;;  %v3055_v0 = vld [vmem:[#allocation7 + $0xf0] ss:$8 sps:$4 sm:$0xff]  }
  0xeb   :  { %1693 = vmatpush1.bf16.msra.mxu1 %v2926_v1  ;;  %v2983_v1 = vld [vmem:[#allocation5 + $0x5e8] ss:$16 sps:$4 sm:$0xff]  }
  0xec   :  { %1694 = vmatprep.subr.bf16.mxu1 %v2931_v2  ;;  %2212 = vmatpush1.bf16.msra.mxu0 %v3022_v3  ;;  %v2988_v2 = vld [vmem:[#allocation5 + $0x60c] ss:$16 sps:$4 sm:$0xff]   ;;  %v2986_v3 = vld [vmem:[#allocation5 + $0x608] ss:$16 sps:$4 sm:$0xff]  }
  0xed   :  { %2213 = vmatprep.subr.bf16.mxu0 %v3027_v4  ;;  %v3060_v4 = vld [vmem:[#allocation7 + $0x104] ss:$8 sps:$4 sm:$0xff]  }
  0xef   :  { %1695 = vmatpush1.bf16.msra.mxu1 %v2929_v5  ;;  %v2991_v5 = vld [vmem:[#allocation5 + $0x62c] ss:$16 sps:$4 sm:$0xff]  }
  0xf0   :  { %1696 = vmatprep.subr.bf16.mxu1 %v2934_v6  ;;  %2214 = vmatpush1.bf16.msra.mxu0 %v3025_v9  ;;  %v2989_v6 = vld [vmem:[#allocation5 + $0x628] ss:$16 sps:$4 sm:$0xff]   ;;  %v2994_v9 = vld [vmem:[#allocation5 + $0x64c] ss:$16 sps:$4 sm:$0xff]  }
  0xf1   :  { %2215 = vmatprep.subr.bf16.mxu0 %v3030_v10  ;;  %v2992_v10 = vld [vmem:[#allocation5 + $0x648] ss:$16 sps:$4 sm:$0xff]  }
  0xf3   :  { %1697 = vmatpush1.bf16.msra.mxu1 %v2932_v11  ;;  %v2997_v11 = vld [vmem:[#allocation5 + $0x66c] ss:$16 sps:$4 sm:$0xff]  }
  0xf4   :  { %1698 = vmatprep.subr.bf16.mxu1 %v2937_v12  ;;  %2216 = vmatpush1.bf16.msra.mxu0 %v3028_v13  ;;  %v2995_v12 = vld [vmem:[#allocation5 + $0x668] ss:$16 sps:$4 sm:$0xff]   ;;  %v3000_v13 = vld [vmem:[#allocation5 + $0x68c] ss:$16 sps:$4 sm:$0xff]  }
  0xf5   :  { %2217 = vmatprep.subr.bf16.mxu0 %v3033_v15  ;;  %v2998_v15 = vld [vmem:[#allocation5 + $0x688] ss:$16 sps:$4 sm:$0xff]  }
  0xf7   :  { %1699 = vmatpush1.bf16.msra.mxu1 %v2935_v16  ;;  %v3003_v16 = vld [vmem:[#allocation5 + $0x6ac] ss:$16 sps:$4 sm:$0xff]  }
  0xf8   :  { %1709 = vmatprep.subr.bf16.mxu1 %v2940_v17  ;;  %2218 = vmatpush1.bf16.msra.mxu0 %v3031_v18  ;;  %v3006_v17 = vld [vmem:[#allocation5 + $0x6cc] ss:$16 sps:$4 sm:$0xff]  }
  0xf9   :  { %2219 = vmatprep.subr.bf16.mxu0 %v3036_v19 }
  0xfa   :  { %1701 = vmatmul.mubr.bf16.vlgmr.msra.gmra.mrb[4].mxu1 %v3275_v8  ;;  %v3045_v8 = vld [vmem:[#allocation7 + $0xb4] ss:$8 sps:$4 sm:$0xff]  }
  0xfb   :  { %1710 = vmatpush1.bf16.msra.mxu1 %v2938_v20  ;;  %1741 = vmatprep.mubr.bf16.mxu1 %v3284_v35  ;;  %v3043_v35 = vld [vmem:[#allocation7 + $0xb0] ss:$8 sps:$4 sm:$0xff]  }
  0xfc   :  { %1711 = vmatprep.subr.bf16.mxu1 %v2943_v21  ;;  %2220 = vmatpush1.bf16.msra.mxu0 %v3034_v22  ;;  %v3004_v20 = vld [vmem:[#allocation5 + $0x6c8] ss:$16 sps:$4 sm:$0xff]   ;;  %v3009_v22 = vld [vmem:[#allocation5 + $0x6ec] ss:$16 sps:$4 sm:$0xff]  }
  0xfd   :  { %2221 = vmatprep.subr.bf16.mxu0 %v3039_v24  ;;  %v3007_v24 = vld [vmem:[#allocation5 + $0x6e8] ss:$16 sps:$4 sm:$0xff]  }
  0xff   :  { %1712 = vmatpush1.bf16.msra.mxu1 %v2941_v25  ;;  %v298_v25 = vlaneseq }
 0x100   :  { %1713 = vmatprep.subr.bf16.mxu1 %v2946_v7  ;;  %2222 = vmatpush1.bf16.msra.mxu0 %v3037_v26 }
 0x101   :  { %2223 = vmatprep.subr.bf16.mxu0 %v3042_v27  ;;  %v3303_v7 = vshrl.u32 %v298_v25, 7  ;;  %v3311_v27 = vld [vmem:[%s3339_s2] sm:$0xf] }
 0x103   :  { %1714 = vmatpush1.bf16.msra.mxu1 %v2944_v28  ;;  %v3306_v26 = vsub.s32 0, %v3303_v7  ;;  %v3314_v28 = vsub.s32 1, %v3303_v7 }
 0x104   :  { %1715 = vmatprep.subr.bf16.mxu1 %v2949_v29  ;;  %2224 = vmatpush1.bf16.msra.mxu0 %v3040_v30 }
 0x105   :  { %2225 = vmatprep.subr.bf16.mxu0 %v3045_v8  ;;  %v301_v29 = vrot.slane %v3311_v27, %v3306_v26 }
 0x107   :  { %1716 = vmatpush1.bf16.msra.mxu1 %v2947_v31 }
 0x108   :  { %1717 = vmatprep.subr.bf16.mxu1 %v2952_v52  ;;  %2226 = vmatpush1.bf16.msra.mxu0 %v3043_v35 }
 0x109   :  { %2227 = vmatprep.subr.bf16.mxu0 %v3048_v32 }
 0x10b   :  { %1718 = vmatpush1.bf16.msra.mxu1 %v2950_v33 }
 0x10c   :  { %1719 = vmatprep.subr.bf16.mxu1 %v2955_v34  ;;  %2228 = vmatpush1.bf16.msra.mxu0 %v3046_v36 }
 0x10d   :  { %2229 = vmatprep.subr.bf16.mxu0 %v3051_v37 }
 0x10f   :  { %1720 = vmatpush1.bf16.msra.mxu1 %v2953_v38 }
 0x110   :  { %1721 = vmatprep.subr.bf16.mxu1 %v2958_v39  ;;  %2230 = vmatpush1.bf16.msra.mxu0 %v3049_v40 }
 0x111   :  { %2231 = vmatprep.subr.bf16.mxu0 %v3054_v59  ;;  %v3084_v59 = vld [vmem:[#allocation7 + $0x184] ss:$8 sps:$4 sm:$0xff]  }
 0x113   :  { %1722 = vmatpush1.bf16.msra.mxu1 %v2956_v41  ;;  %v3058_v41 = vld [vmem:[#allocation7 + $0x100] ss:$8 sps:$4 sm:$0xff]  }
 0x114   :  { %1723 = vmatprep.subr.bf16.mxu1 %v2961_v42  ;;  %2232 = vmatpush1.bf16.msra.mxu0 %v3052_v60  ;;  %v3082_v60 = vld [vmem:[#allocation7 + $0x180] ss:$8 sps:$4 sm:$0xff]  }
 0x115   :  { %2233 = vmatprep.subr.bf16.mxu0 %v3057_v63  ;;  %v3090_v63 = vld [vmem:[#allocation7 + $0x1a4] ss:$8 sps:$4 sm:$0xff]  }
 0x117   :  { %1724 = vmatpush1.bf16.msra.mxu1 %v2959_v43  ;;  %v3063_v43 = vld [vmem:[#allocation7 + $0x114] ss:$8 sps:$4 sm:$0xff]  }
 0x118   :  { %1725 = vmatprep.subr.bf16.mxu1 %v2964_v44  ;;  %2234 = vmatpush1.bf16.msra.mxu0 %v3055_v0  ;;  %v3061_v44 = vld [vmem:[#allocation7 + $0x110] ss:$8 sps:$4 sm:$0xff]   ;;  %v3088_v0 = vld [vmem:[#allocation7 + $0x1a0] ss:$8 sps:$4 sm:$0xff]  }
 0x119   :  { %2244 = vmatprep.subr.bf16.mxu0 %v3060_v4  ;;  %v3094_v4 = vld [vmem:[#allocation7 + $0x1c0] ss:$8 sps:$4 sm:$0xff]  }
 0x11b   :  { %1726 = vmatpush1.bf16.msra.mxu1 %v2962_v45  ;;  %v3066_v45 = vld [vmem:[#allocation7 + $0x124] ss:$8 sps:$4 sm:$0xff]  }
 0x11c   :  { %1727 = vmatprep.subr.bf16.mxu1 %v2967_v47  ;;  %v3064_v47 = vld [vmem:[#allocation7 + $0x120] ss:$8 sps:$4 sm:$0xff]  }
 0x11f   :  { %1728 = vmatpush1.bf16.msra.mxu1 %v2965_v48  ;;  %v3069_v48 = vld [vmem:[#allocation7 + $0x134] ss:$8 sps:$4 sm:$0xff]  }
 0x120   :  { %1729 = vmatprep.subr.bf16.mxu1 %v2970_v49  ;;  %v3067_v49 = vld [vmem:[#allocation7 + $0x130] ss:$8 sps:$4 sm:$0xff]  }
 0x123   :  { %1730 = vmatpush1.bf16.msra.mxu1 %v2968_v50  ;;  %v3072_v50 = vld [vmem:[#allocation7 + $0x144] ss:$8 sps:$4 sm:$0xff]  }
 0x124   :  { %1731 = vmatprep.subr.bf16.mxu1 %v2973_v51  ;;  %v3070_v51 = vld [vmem:[#allocation7 + $0x140] ss:$8 sps:$4 sm:$0xff]  }
 0x127   :  { %1732 = vmatpush1.bf16.msra.mxu1 %v2971_v53  ;;  %v3075_v53 = vld [vmem:[#allocation7 + $0x154] ss:$8 sps:$4 sm:$0xff]  }
 0x128   :  { %1733 = vmatprep.subr.bf16.mxu1 %v2976_v54  ;;  %v3073_v54 = vld [vmem:[#allocation7 + $0x150] ss:$8 sps:$4 sm:$0xff]  }
 0x12b   :  { %1734 = vmatpush1.bf16.msra.mxu1 %v2974_v55  ;;  %v3078_v55 = vld [vmem:[#allocation7 + $0x164] ss:$8 sps:$4 sm:$0xff]  }
 0x12c   :  { %1735 = vmatprep.subr.bf16.mxu1 %v2979_v56  ;;  %v3076_v56 = vld [vmem:[#allocation7 + $0x160] ss:$8 sps:$4 sm:$0xff]  }
 0x12f   :  { %1736 = vmatpush1.bf16.msra.mxu1 %v2977_v57  ;;  %v3081_v57 = vld [vmem:[#allocation7 + $0x174] ss:$8 sps:$4 sm:$0xff]  }
 0x130   :  { %1737 = vmatprep.subr.bf16.mxu1 %v2982_v58  ;;  %v3079_v58 = vld [vmem:[#allocation7 + $0x170] ss:$8 sps:$4 sm:$0xff]  }
 0x133   :  { %1738 = vmatpush1.bf16.msra.mxu1 %v2980_v61  ;;  %v3087_v61 = vld [vmem:[#allocation7 + $0x194] ss:$8 sps:$4 sm:$0xff]  }
 0x134   :  { %1739 = vmatprep.subr.bf16.mxu1 %v2985_v62  ;;  %v3085_v62 = vld [vmem:[#allocation7 + $0x190] ss:$8 sps:$4 sm:$0xff]  }
 0x137   :  { %1740 = vmatpush1.bf16.msra.mxu1 %v2983_v1  ;;  %v3093_v1 = vld [vmem:[#allocation7 + $0x1b4] ss:$8 sps:$4 sm:$0xff]  }
 0x138   :  { %1750 = vmatprep.subr.bf16.mxu1 %v2988_v2  ;;  %v3091_v2 = vld [vmem:[#allocation7 + $0x1b0] ss:$8 sps:$4 sm:$0xff]  }
 0x13a   :  { %1742 = vmatmul.mubr.bf16.vlgmr.msra.gmra.mrb[4].mxu1 %v3289_v14  ;;  %v3001_v14 = vld [vmem:[#allocation5 + $0x6a8] ss:$16 sps:$4 sm:$0xff]  }
 0x13b   :  { %1751 = vmatpush1.bf16.msra.mxu1 %v2986_v3  ;;  %1782 = vmatprep.mubr.bf16.mxu1 %v3187_v23  ;;  %v3096_v3 = vld [vmem:[#allocation7 + $0x1c4] ss:$8 sps:$4 sm:$0xff]  }
 0x13c   :  { %1752 = vmatprep.subr.bf16.mxu1 %v2991_v5  ;;  %v3099_v5 = vld [vmem:[#allocation7 + $0x1d4] ss:$8 sps:$4 sm:$0xff]  }
 0x13f   :  { %1753 = vmatpush1.bf16.msra.mxu1 %v2989_v6  ;;  %v3097_v6 = vld [vmem:[#allocation7 + $0x1d0] ss:$8 sps:$4 sm:$0xff]  }
 0x140   :  { %1754 = vmatprep.subr.bf16.mxu1 %v2994_v9  ;;  %v3102_v9 = vld [vmem:[#allocation7 + $0x1e4] ss:$8 sps:$4 sm:$0xff]  }
 0x143   :  { %1755 = vmatpush1.bf16.msra.mxu1 %v2992_v10  ;;  %v3100_v10 = vld [vmem:[#allocation7 + $0x1e0] ss:$8 sps:$4 sm:$0xff]  }
 0x144   :  { %1756 = vmatprep.subr.bf16.mxu1 %v2997_v11  ;;  %v3105_v11 = vld [vmem:[#allocation7 + $0x1f4] ss:$8 sps:$4 sm:$0xff]  }
 0x147   :  { %1757 = vmatpush1.bf16.msra.mxu1 %v2995_v12  ;;  %v3103_v12 = vld [vmem:[#allocation7 + $0x1f0] ss:$8 sps:$4 sm:$0xff]  }
 0x148   :  { %1758 = vmatprep.subr.bf16.mxu1 %v3000_v13  ;;  %v308_v13 = vsub.s32 2, %v3303_v7 }
 0x14b   :  { %1759 = vmatpush1.bf16.msra.mxu1 %v2998_v15  ;;  %v312_v15 = vsub.s32 3, %v3303_v7  ;;  %v1871_v7 = vld [vmem:[%s3341_s4] sm:$0x3] }
 0x14c   :  { %1760 = vmatprep.subr.bf16.mxu1 %v3003_v16  ;;  %v309_v16 = vrot.slane %v3311_v27, %v308_v13 }
 0x14d   :  { %v1497_v18 = vpop.f32.mrb[0].mxu1 }
 0x14e   :  { %v1499_v23 = vpop.f32.mrb[1].mxu1  ;;  %v1498_v30 = vadd.f32 %v1497_v18, %v301_v29 }
 0x14f   :  { %v1501_v19 = vpop.f32.mrb[2].mxu1  ;;  %1761 = vmatpush1.bf16.msra.mxu1 %v3001_v14  ;;  %v313_v14 = vrot.slane %v3311_v27, %v312_v15 }
 0x150   :  { %v1502_v21 = vpop.f32.mrb[3].mxu1  ;;  %1762 = vmatprep.subr.bf16.mxu1 %v3006_v17 }
 0x153   :  { %1763 = vmatpush1.bf16.msra.mxu1 %v3004_v20 }
 0x154   :  { %1764 = vmatprep.subr.bf16.mxu1 %v3009_v22 }
 0x157   :  { %1765 = vmatpush1.bf16.msra.mxu1 %v3007_v24 }
 0x15a   :  { %1783 = vmatmul.mubr.bf16.vlgmr.msra.gmra.mrb[4].mxu1 %v3295_v46  ;;  %v305_v46 = vrot.slane %v3311_v27, %v3314_v28  ;;  %v1876_v27 = vrot.slane %v1871_v7, %v3306_v26 }
 0x15c   :  { %v1500_v8 = vadd.f32 %v1499_v23, %v305_v46 }
 0x1ae   :  { %v1620_v31 = vpop.f32.mrb[0].mxu0 }
 0x1af   :  { %v2628_v52 = vadd.f32 %v1620_v31, %v1498_v30  ;;  %v1622_v35 = vpop.f32.mrb[1].mxu0  ;;  %v2291_v31 = vld [vmem:[%s3342_s5] sm:$0x3] }
 0x1b0   :  { %v2630_v32 = vadd.f32 %v1622_v35, %v1500_v8  ;;  %v1624_v33 = vpop.f32.mrb[2].mxu0  ;;  %v1880_v8 = vrot.slane %v1871_v7, %v3314_v28 }
 0x1b1   :  { %vm1791_vm0 = vcmp.gt.f32.partialorder %v2628_v52, 0.0  ;;  %v1795_v34 = vmul.f32 0.1, %v2628_v52  ;;  %v1625_v36 = vpop.f32.mrb[3].mxu0 }
 0x1b2   :  { %vm1792_vm1 = vcmp.gt.f32.partialorder %v2630_v32, 0.0  ;;  %v1796_v37 = vmul.f32 0.1, %v2630_v32  ;;  %v2296_v36 = vrot.slane %v2291_v31, %v3306_v26 }
 0x1b3   :  { %v1799_v38 = vsel %vm1791_vm0, %v2628_v52, %v1795_v34 }
 0x1b4   :  { %v1800_v39 = vsel %vm1792_vm1, %v2630_v32, %v1796_v37  ;;  %v1803_v42 = vpack.c.bf16 %v1799_v38, %v1799_v38 }
 0x1b5   :  { %v1804_v40 = vpack.c.bf16 %v1800_v39, %v1800_v39  ;;  %v2300_v39 = vrot.slane %v2291_v31, %v3314_v28 }
 0x1b7   :  { %2235 = vmatprep.mubr.bf16.mxu0 %v1804_v40 }
 0x1b8   :  { %2236 = vmatmul.mubr.bf16.vlgmr.msra.gmra.mrb[4].mxu0 %v1803_v42 }
 0x1b9   :  { %2245 = vmatpush1.bf16.msra.mxu0 %v3058_v41 }
 0x1ba   :  { %2246 = vmatprep.subr.bf16.mxu0 %v3063_v43 }
 0x1bd   :  { %2247 = vmatpush1.bf16.msra.mxu0 %v3061_v44 }
 0x1be   :  { %2248 = vmatprep.subr.bf16.mxu0 %v3066_v45 }
 0x1c1   :  { %2249 = vmatpush1.bf16.msra.mxu0 %v3064_v47  ;;  %v2625_v47 = vld [vmem:[#allocation2] ss:$0 sm:$0xff] }
 0x1c2   :  { %2250 = vmatprep.subr.bf16.mxu0 %v3069_v48 }
 0x1c5   :  { %2251 = vmatpush1.bf16.msra.mxu0 %v3067_v49 }
 0x1c6   :  { %2252 = vmatprep.subr.bf16.mxu0 %v3072_v50 }
 0x1c9   :  { %2253 = vmatpush1.bf16.msra.mxu0 %v3070_v51 }
 0x1ca   :  { %2254 = vmatprep.subr.bf16.mxu0 %v3075_v53 }
 0x1cd   :  { %2255 = vmatpush1.bf16.msra.mxu0 %v3073_v54 }
 0x1ce   :  { %2256 = vmatprep.subr.bf16.mxu0 %v3078_v55 }
 0x1d1   :  { %2257 = vmatpush1.bf16.msra.mxu0 %v3076_v56 }
 0x1d2   :  { %2258 = vmatprep.subr.bf16.mxu0 %v3081_v57 }
 0x1d5   :  { %2259 = vmatpush1.bf16.msra.mxu0 %v3079_v58 }
 0x1d6   :  { %2260 = vmatprep.subr.bf16.mxu0 %v3084_v59 }
 0x1d9   :  { %2261 = vmatpush1.bf16.msra.mxu0 %v3082_v60 }
 0x1da   :  { %2262 = vmatprep.subr.bf16.mxu0 %v3087_v61 }
 0x1dd   :  { %2263 = vmatpush1.bf16.msra.mxu0 %v3085_v62 }
 0x1de   :  { %2264 = vmatprep.subr.bf16.mxu0 %v3090_v63 }
 0x1e1   :  { %2265 = vmatpush1.bf16.msra.mxu0 %v3088_v0 }
 0x1e2   :  { %2266 = vmatprep.subr.bf16.mxu0 %v3093_v1 }
 0x1e5   :  { %2267 = vmatpush1.bf16.msra.mxu0 %v3091_v2 }
 0x1e6   :  { %2268 = vmatprep.subr.bf16.mxu0 %v3096_v3 }
 0x1e9   :  { %2269 = vmatpush1.bf16.msra.mxu0 %v3094_v4 }
 0x1ea   :  { %2270 = vmatprep.subr.bf16.mxu0 %v3099_v5 }
 0x1ed   :  { %2271 = vmatpush1.bf16.msra.mxu0 %v3097_v6 }
 0x1ee   :  { %2272 = vmatprep.subr.bf16.mxu0 %v3102_v9 }
 0x1f1   :  { %2273 = vmatpush1.bf16.msra.mxu0 %v3100_v10 }
 0x1f2   :  { %2274 = vmatprep.subr.bf16.mxu0 %v3105_v11 }
 0x1f5   :  { %2275 = vmatpush1.bf16.msra.mxu0 %v3103_v12 }
 0x22d   :  { %v1784_v17 = vpop.f32.mrb[4].mxu1 }
 0x22e   :  { %v2631_v18 = vadd.f32 %v1784_v17, %v309_v16  ;;  %v1786_v23 = vpop.f32.mrb[5].mxu1 }
 0x22f   :  { %v2632_v19 = vadd.f32 %v1786_v23, %v313_v14  ;;  %v1788_v20 = vpop.f32.mrb[6].mxu1 }
 0x230   :  { %vm1793_vm2 = vcmp.gt.f32.partialorder %v2631_v18, 0.0  ;;  %v1797_v21 = vmul.f32 0.1, %v2631_v18  ;;  %v1789_v22 = vpop.f32.mrb[7].mxu1 }
 0x231   :  { %vm1794_vm3 = vcmp.gt.f32.partialorder %v2632_v19, 0.0  ;;  %v1798_v24 = vmul.f32 0.1, %v2632_v19 }
 0x232   :  { %v1801_v25 = vsel %vm1793_vm2, %v2631_v18, %v1797_v21 }
 0x233   :  { %v1802_v29 = vsel %vm1794_vm3, %v2632_v19, %v1798_v24  ;;  %v1805_v30 = vpack.c.bf16 %v1801_v25, %v1801_v25 }
 0x234   :  { %v1806_v46 = vpack.c.bf16 %v1802_v29, %v1802_v29 }
 0x236   :  { %2276 = vmatprep.mubr.bf16.mxu0 %v1806_v46 }
 0x237   :  { %2277 = vmatmul.mubr.bf16.vlgmr.msra.gmra.mrb[4].mxu0 %v1805_v30 }
 0x30a   :  { %v2278_v52 = vpop.f32.mrb[4].mxu0 }
 0x30b   :  { %v2633_v35 = vadd.f32 %v2278_v52, %v1876_v27  ;;  %v2280_v32 = vpop.f32.mrb[5].mxu0 }
 0x30c   :  { %v2634_v33 = vadd.f32 %v2280_v32, %v1880_v8  ;;  %v2282_v34 = vpop.f32.mrb[6].mxu0 }
 0x30d   :  { %vm2285_vm4 = vcmp.gt.f32.partialorder %v2633_v35, 0.0  ;;  %v2287_v37 = vmul.f32 0.1, %v2633_v35  ;;  %v2283_v38 = vpop.f32.mrb[7].mxu0 }
 0x30e   :  { %vm2286_vm5 = vcmp.gt.f32.partialorder %v2634_v33, 0.0  ;;  %v2288_v40 = vmul.f32 0.1, %v2634_v33 }
 0x30f   :  { %v2289_v41 = vsel %vm2285_vm4, %v2633_v35, %v2287_v37 }
 0x310   :  { %v2290_v42 = vsel %vm2286_vm5, %v2634_v33, %v2288_v40  ;;  %v2303_v43 = vmul.f32 %v2296_v36, %v2289_v41 }
 0x311   :  { %v2304_v44 = vmul.f32 %v2300_v39, %v2290_v42 }
 0x313   :  { %v2305_v45 = vadd.f32 %v2304_v44, %v2303_v43 }
 0x315   :  { %2306 = vadd.xlane.f32.xlu0 %v2305_v45 }
 0x3a2   :  { %v2307_v48 = vpop.xlane.xlu0 %2306 }
 0x3a3   :  { %v2315_v49 = vadd.f32 %v2625_v47, %v2307_v48 }
 0x3a5   :  { %v2626_v50 = vmul.f32 -1.442695, %v2315_v49 }
 0x3a7   :  { %3106 = vpow2.f32 %v2626_v50 }
 0x3b1   :  { %v3107_v51 = vpop.eup %3106 }
 0x3b2   :  { %v2319_v26 = vadd.f32 1.0, %v3107_v51 }
 0x3b4   :  { %3108 = vrcp.f32 %v2319_v26 }
 0x3be   :  { %v3109_v53 = vpop.eup %3108 }
 0x3bf   :  { %2323 = vst.msk [vmem:[%s3344_s7] sm:$0xff] %vm2322_vm6, %v3109_v53 }
 0x3c0   :  { %2328 = vsyncpa [#allocation4], 1 }
 0x3c1   :  { %2329 = vsyncpa [#allocation6], 1 }

</bundles_post_ra>
